<compile_context>
chip_gen: v6e
topology: v6e:2x2x1
jax: 0.10.0
libtpu: 0.0.40
codegen_flags: <defaults>
</compile_context>

<pallas_src>
import functools

import jax
import jax.numpy as jnp
import numpy as np
from jax.experimental import pallas as pl
from jax.experimental.pallas import tpu as pltpu

LOG_2PI = float(np.log(2.0 * np.pi))
OUT_W = 128          # lane-dense packed output width
TB_MAX = 256         # batch tile (rows) for large batches


def _policy_kernel(obs_ref, w1_ref, w2_ref, wh_ref, slab_ref, out_ref, *, n_disc, n_con):
    f = obs_ref[...]                               # (tb, F) f32
    slab = slab_ref[...]                           # (4, 3H) f32
    n_head = n_disc + n_con + 1

    b1 = slab[0:1, :]                              # (1, 3H)
    b2 = slab[1:2, :]                              # (1, 3H)
    bh = slab[2:3, 0:n_head]                       # (1, n_head)
    logp_c_const = slab[3:4, 0:1]                  # (1, 1)  = -(sum(log_std) + 0.5*n_con*log(2pi))

    # --- three fused matmuls on the MXU (f32 accumulate) ---
    h1 = jnp.tanh(jnp.dot(f, w1_ref[...], preferred_element_type=jnp.float32) + b1)     # (tb, 3H)
    h2 = jnp.tanh(jnp.dot(h1, w2_ref[...], preferred_element_type=jnp.float32) + b2)    # (tb, 3H)
    head = jnp.dot(h2, wh_ref[...], preferred_element_type=jnp.float32) + bh            # (tb, n_head)

    logits = head[:, 0:n_disc]                     # discrete-actor logits
    mean = head[:, n_disc:n_disc + n_con]          # continuous-actor mean (deterministic action)
    values = head[:, n_disc + n_con:n_head]        # critic value

    # --- Categorical: deterministic action = torch-style first argmax; log_prob via log-softmax ---
    m = jnp.max(logits, axis=-1, keepdims=True)
    ids = jax.lax.broadcasted_iota(jnp.int32, logits.shape, 1)
    first_argmax = jnp.min(
        jnp.where(logits == m, ids, jnp.int32(n_disc)), axis=-1, keepdims=True
    )                                              # (tb, 1) int32
    lse = m + jnp.log(jnp.sum(jnp.exp(logits - m), axis=-1, keepdims=True))
    chosen = jnp.sum(jnp.where(ids == first_argmax, logits, 0.0), axis=-1, keepdims=True)
    logp_d = chosen - lse                          # (tb, 1)

    # --- DiagGaussian with action == mean: log_prob is a batch-independent constant ---
    tb = f.shape[0]
    logp_c = jnp.broadcast_to(logp_c_const, (tb, 1))

    # --- pack everything into one lane-dense (tb, 128) block ---
    out_ref[...] = jnp.zeros_like(out_ref)
    out_ref[:, 0:n_con] = mean
    out_ref[:, n_con:n_con + 1] = values
    out_ref[:, n_con + 1:n_con + 2] = logp_d
    out_ref[:, n_con + 2:n_con + 3] = logp_c
    out_ref[:, n_con + 3:n_con + 4] = first_argmax.astype(jnp.float32)  # index <= 2^24, exact in f32


def fuse_params(p):
    """One-time packing of the 20 PyTorch-style parameters into 4 fused kernel arrays."""
    F, H = p["wd1"].shape
    n_disc = p["wad"].shape[1]
    n_con = p["wac"].shape[1]
    n_head = n_disc + n_con + 1

    w1 = jnp.concatenate([p["wd1"], p["wc1"], p["wv1"]], axis=1)                 # (F, 3H)
    w2 = jax.scipy.linalg.block_diag(p["wd2"], p["wc2"], p["wv2"])               # (3H, 3H)
    wh = jax.scipy.linalg.block_diag(p["wad"], p["wac"], p["wv"])                # (3H, n_head)

    b1 = jnp.concatenate([p["bd1"], p["bc1"], p["bv1"]], axis=1)[0]              # (3H,)
    b2 = jnp.concatenate([p["bd2"], p["bc2"], p["bv2"]], axis=1)[0]
    bh = jnp.concatenate([p["bad"], p["bac"], p["bv"]], axis=1)[0]               # (n_head,)

    # analytic Gaussian log-prob of the deterministic action (== mean)
    logp_c_const = -(jnp.sum(p["log_std"]) + 0.5 * n_con * LOG_2PI)

    slab = jnp.zeros((4, 3 * H), jnp.float32)
    slab = slab.at[0, :].set(b1)
    slab = slab.at[1, :].set(b2)
    slab = slab.at[2, :n_head].set(bh)
    slab = slab.at[3, 0].set(logp_c_const)
    slab = slab.at[3, 1:1 + n_con].set(p["log_std"][0])   # kept for a future stochastic path

    return dict(w1=w1, w2=w2, wh=wh, slab=slab, n_disc=int(n_disc), n_con=int(n_con))


def hy_actor_critic_forward(obs, fused):
    """Deterministic HyActorCriticPolicy.forward.

    obs: (B, F) float32 flattened features (FlattenExtractor semantics).
    Returns (actions_disc, actions_con, values, log_prob_disc, log_prob_con).
    """
    B, F = obs.shape
    n_disc, n_con = fused["n_disc"], fused["n_con"]
    H3 = fused["w1"].shape[1]
    n_head = fused["wh"].shape[1]

    # Batch tiling: whole batch as one block when small; otherwise 256-row tiles (zero-padded).
    if B <= TB_MAX:
        tb, Bp, obs_p = B, B, obs
    else:
        tb = TB_MAX
        Bp = ((B + tb - 1) // tb) * tb
        obs_p = jnp.zeros((Bp, F), obs.dtype).at[:B].set(obs)
    grid = (Bp // tb,)

    flops = 2.0 * Bp * (F * H3 + H3 * H3 + H3 * n_head)
    transcendentals = Bp * (2 * H3 + n_disc + 1)
    bytes_accessed = 4 * (obs_p.size + fused["w1"].size + fused["w2"].size
                          + fused["wh"].size + fused["slab"].size + Bp * OUT_W)

    kernel = functools.partial(_policy_kernel, n_disc=n_disc, n_con=n_con)

    out = pl.pallas_call(
        kernel,
        out_shape=jax.ShapeDtypeStruct((Bp, OUT_W), jnp.float32),
        grid=grid,
        in_specs=[
            pl.BlockSpec((tb, F), lambda i: (i, 0)),                 # obs rows tile over the grid
            pl.BlockSpec(fused["w1"].shape, lambda i: (0, 0)),       # weights stay resident
            pl.BlockSpec(fused["w2"].shape, lambda i: (0, 0)),
            pl.BlockSpec(fused["wh"].shape, lambda i: (0, 0)),
            pl.BlockSpec(fused["slab"].shape, lambda i: (0, 0)),
        ],
        out_specs=pl.BlockSpec((tb, OUT_W), lambda i: (i, 0)),
        compiler_params=pltpu.CompilerParams(dimension_semantics=("parallel",)),
        cost_estimate=pl.CostEstimate(
            flops=int(flops),
            transcendentals=int(transcendentals),
            bytes_accessed=int(bytes_accessed),
        ),
    )(obs_p, fused["w1"], fused["w2"], fused["wh"], fused["slab"])

    # Unpack the lane-dense block; match PyTorch forward's output shaping.
    actions_con = out[:B, 0:n_con]                       # (B, n_con)
    values = out[:B, n_con:n_con + 1]                    # (B, 1)
    log_prob_disc = out[:B, n_con + 1]                   # (B,)
    log_prob_con = out[:B, n_con + 2]                    # (B,)
    actions_disc = out[:B, n_con + 3].astype(jnp.int32)  # (B,)  Discrete space -> flat shape
    return actions_disc, actions_con, values, log_prob_disc, log_prob_con


def _init_params(key, features_dim, hidden, n_disc, n_con):
    """Deterministic synthetic init (orthogonal-ish via QR), biases = 0, log_std_init = 0."""
    def ortho(key, shape, gain):
        a = jax.random.normal(key, shape, dtype=jnp.float32)
        q, r = jnp.linalg.qr(a if shape[0] >= shape[1] else a.T)
        q = q * jnp.sign(jnp.diagonal(r))[None, :]
        if shape[0] < shape[1]:
            q = q.T
        return gain * q[: shape[0], : shape[1]]

    keys = jax.random.split(key, 9)
    g = float(np.sqrt(2.0))
    return {
        "wd1": ortho(keys[0], (features_dim, hidden), g), "bd1": jnp.zeros((1, hidden), jnp.float32),
        "wd2": ortho(keys[1], (hidden, hidden), g),       "bd2": jnp.zeros((1, hidden), jnp.float32),
        "wc1": ortho(keys[2], (features_dim, hidden), g), "bc1": jnp.zeros((1, hidden), jnp.float32),
        "wc2": ortho(keys[3], (hidden, hidden), g),       "bc2": jnp.zeros((1, hidden), jnp.float32),
        "wv1": ortho(keys[4], (features_dim, hidden), g), "bv1": jnp.zeros((1, hidden), jnp.float32),
        "wv2": ortho(keys[5], (hidden, hidden), g),       "bv2": jnp.zeros((1, hidden), jnp.float32),
        "wad": ortho(keys[6], (hidden, n_disc), 0.01), "bad": jnp.zeros((1, n_disc), jnp.float32),
        "wac": ortho(keys[7], (hidden, n_con), 0.01),  "bac": jnp.zeros((1, n_con), jnp.float32),
        "wv":  ortho(keys[8], (hidden, 1), 1.0),       "bv":  jnp.zeros((1, 1), jnp.float32),
        "log_std": jnp.zeros((1, n_con), jnp.float32),
    }


def _reference_forward(obs, p):
    """Pure-JAX reference (unfused) for verification."""
    def lin(x, w, b):
        return x @ w + b
    hd = jnp.tanh(lin(jnp.tanh(lin(obs, p["wd1"], p["bd1"])), p["wd2"], p["bd2"]))
    hc = jnp.tanh(lin(jnp.tanh(lin(obs, p["wc1"], p["bc1"])), p["wc2"], p["bc2"]))
    hv = jnp.tanh(lin(jnp.tanh(lin(obs, p["wv1"], p["bv1"])), p["wv2"], p["bv2"]))
    logits = lin(hd, p["wad"], p["bad"])
    mean = lin(hc, p["wac"], p["bac"])
    values = lin(hv, p["wv"], p["bv"])
    act_d = jnp.argmax(logits, axis=-1)
    logp_d = jnp.take_along_axis(jax.nn.log_softmax(logits, axis=-1), act_d[:, None], axis=-1)[:, 0]
    n_con = mean.shape[1]
    logp_c = jnp.full((obs.shape[0],), -(jnp.sum(p["log_std"]) + 0.5 * n_con * LOG_2PI))
    return act_d, mean, values, logp_d, logp_c


if __name__ == "__main__":
    # Small shapes consistent with the module: flattened features_dim=32,
    # net_arch=dict(pi=[64,64], vf=[64,64]), hybrid action space Discrete(8) + Box(4,).
    B, F, H, N_DISC, N_CON = 8, 32, 64, 8, 4

    key = jax.random.PRNGKey(0)
    k_obs, k_par = jax.random.split(key)
    obs = jax.random.normal(k_obs, (B, F), dtype=jnp.float32)    # FlattenExtractor output
    params = _init_params(k_par, F, H, N_DISC, N_CON)
    fused = fuse_params(params)

    outs = hy_actor_critic_forward(obs, fused)
    outs = jax.block_until_ready(outs)
    actions_disc, actions_con, values, log_prob_disc, log_prob_con = outs

    # sanity check vs. pure-JAX reference
    r_act_d, r_act_c, r_vals, r_lpd, r_lpc = _reference_forward(obs, params)
    np.testing.assert_array_equal(np.asarray(actions_disc), np.asarray(r_act_d))
    np.testing.assert_allclose(np.asarray(actions_con), np.asarray(r_act_c), rtol=1e-4, atol=1e-5)
    np.testing.assert_allclose(np.asarray(values), np.asarray(r_vals), rtol=1e-4, atol=1e-5)
    np.testing.assert_allclose(np.asarray(log_prob_disc), np.asarray(r_lpd), rtol=1e-4, atol=1e-5)
    np.testing.assert_allclose(np.asarray(log_prob_con), np.asarray(r_lpc), rtol=1e-4, atol=1e-5)

    # TODO(synk): stochastic sampling path (deterministic=False) needs torch-equivalent RNG;
    # only the deterministic path is implemented (log_std is carried in the bias slab for later use).
    print("KERNEL_OK")
</pallas_src>

<mosaic_0001>
module attributes {stable_mosaic.version = 11 : i64} {
  func.func @_policy_kernel(%arg0: i32, %arg1: memref<8x32xf32, #tpu.memory_space<vmem>>, %arg2: memref<32x192xf32, #tpu.memory_space<vmem>>, %arg3: memref<192x192xf32, #tpu.memory_space<vmem>>, %arg4: memref<192x13xf32, #tpu.memory_space<vmem>>, %arg5: memref<4x192xf32, #tpu.memory_space<vmem>>, %arg6: memref<8x128xf32, #tpu.memory_space<vmem>>) attributes {dimension_semantics = [#tpu.dimension_semantics<parallel>], iteration_bounds = array<i64: 1>, scalar_prefetch = 0 : i64, scratch_operands = 0 : i64, tpu.core_type = #tpu.core_type<tc>, window_params = [{transform_indices = @transform_0, window_bounds = array<i64: 8, 32>}, {pipeline_mode = #tpu.pipeline_mode<synchronous>, transform_indices = @transform_1, window_bounds = array<i64: 32, 192>}, {pipeline_mode = #tpu.pipeline_mode<synchronous>, transform_indices = @transform_2, window_bounds = array<i64: 192, 192>}, {pipeline_mode = #tpu.pipeline_mode<synchronous>, transform_indices = @transform_3, window_bounds = array<i64: 192, 13>}, {pipeline_mode = #tpu.pipeline_mode<synchronous>, transform_indices = @transform_4, window_bounds = array<i64: 4, 192>}, {transform_indices = @transform_5, window_bounds = array<i64: 8, 128>}]} {
    %c0 = arith.constant 0 : index
    %c0_0 = arith.constant 0 : index
    %0 = vector.load %arg1[%c0, %c0_0] : memref<8x32xf32, #tpu.memory_space<vmem>>, vector<8x32xf32>
    %c0_1 = arith.constant 0 : index
    %c0_2 = arith.constant 0 : index
    %1 = vector.load %arg5[%c0_1, %c0_2] : memref<4x192xf32, #tpu.memory_space<vmem>>, vector<4x192xf32>
    %2 = vector.extract_strided_slice %1 {offsets = [0, 0], sizes = [1, 192], strides = [1, 1]} : vector<4x192xf32> to vector<1x192xf32>
    %3 = vector.extract_strided_slice %1 {offsets = [1, 0], sizes = [1, 192], strides = [1, 1]} : vector<4x192xf32> to vector<1x192xf32>
    %4 = vector.extract_strided_slice %1 {offsets = [2, 0], sizes = [1, 13], strides = [1, 1]} : vector<4x192xf32> to vector<1x13xf32>
    %5 = vector.extract_strided_slice %1 {offsets = [3, 0], sizes = [1, 1], strides = [1, 1]} : vector<4x192xf32> to vector<1x1xf32>
    %c0_3 = arith.constant 0 : index
    %c0_4 = arith.constant 0 : index
    %6 = vector.load %arg2[%c0_3, %c0_4] : memref<32x192xf32, #tpu.memory_space<vmem>>, vector<32x192xf32>
    %cst = arith.constant dense<0.000000e+00> : vector<8x192xf32>
    %7 = tpu.matmul %0, %6, %cst {dimension_numbers = #tpu.dot_dimension_numbers<[1], [0], [0], [1], [0, 0, 1, 1], [], []>} : vector<8x32xf32>, vector<32x192xf32>, vector<8x192xf32> -> vector<8x192xf32>
    %8 = vector.broadcast %2 : vector<1x192xf32> to vector<8x192xf32>
    %9 = arith.addf %7, %8 : vector<8x192xf32>
    %10 = math.tanh %9 : vector<8x192xf32>
    %c0_5 = arith.constant 0 : index
    %c0_6 = arith.constant 0 : index
    %11 = vector.load %arg3[%c0_5, %c0_6] : memref<192x192xf32, #tpu.memory_space<vmem>>, vector<192x192xf32>
    %cst_7 = arith.constant dense<0.000000e+00> : vector<8x192xf32>
    %12 = tpu.matmul %10, %11, %cst_7 {dimension_numbers = #tpu.dot_dimension_numbers<[1], [0], [0], [1], [0, 0, 1, 1], [], []>} : vector<8x192xf32>, vector<192x192xf32>, vector<8x192xf32> -> vector<8x192xf32>
    %13 = vector.broadcast %3 : vector<1x192xf32> to vector<8x192xf32>
    %14 = arith.addf %12, %13 : vector<8x192xf32>
    %15 = math.tanh %14 : vector<8x192xf32>
    %c0_8 = arith.constant 0 : index
    %c0_9 = arith.constant 0 : index
    %16 = vector.load %arg4[%c0_8, %c0_9] : memref<192x13xf32, #tpu.memory_space<vmem>>, vector<192x13xf32>
    %cst_10 = arith.constant dense<0.000000e+00> : vector<8x13xf32>
    %17 = tpu.matmul %15, %16, %cst_10 {dimension_numbers = #tpu.dot_dimension_numbers<[1], [0], [0], [1], [0, 0, 1, 1], [], []>} : vector<8x192xf32>, vector<192x13xf32>, vector<8x13xf32> -> vector<8x13xf32>
    %18 = vector.broadcast %4 : vector<1x13xf32> to vector<8x13xf32>
    %19 = arith.addf %17, %18 : vector<8x13xf32>
    %20 = vector.extract_strided_slice %19 {offsets = [0, 0], sizes = [8, 8], strides = [1, 1]} : vector<8x13xf32> to vector<8x8xf32>
    %21 = vector.extract_strided_slice %19 {offsets = [0, 8], sizes = [8, 4], strides = [1, 1]} : vector<8x13xf32> to vector<8x4xf32>
    %22 = vector.extract_strided_slice %19 {offsets = [0, 12], sizes = [8, 1], strides = [1, 1]} : vector<8x13xf32> to vector<8x1xf32>
    %cst_11 = arith.constant dense<0xFF800000> : vector<8xf32>
    %23 = vector.multi_reduction <maximumf>, %20, %cst_11 [1] : vector<8x8xf32> to vector<8xf32>
    %24 = vector.shape_cast %23 : vector<8xf32> to vector<8x1xf32>
    %25 = tpu.iota {dimensions = array<i32: 1>} : vector<8x8xi32>
    %26 = vector.broadcast %24 : vector<8x1xf32> to vector<8x8xf32>
    %27 = arith.cmpf oeq, %20, %26 : vector<8x8xf32>
    %c8_i32 = arith.constant 8 : i32
    %28 = vector.broadcast %c8_i32 : i32 to vector<8x8xi32>
    %29 = arith.select %27, %25, %28 : vector<8x8xi1>, vector<8x8xi32>
    %cst_12 = arith.constant dense<2147483647> : vector<8xi32>
    %30 = vector.multi_reduction <minsi>, %29, %cst_12 [1] : vector<8x8xi32> to vector<8xi32>
    %31 = vector.shape_cast %30 : vector<8xi32> to vector<8x1xi32>
    %32 = vector.broadcast %24 : vector<8x1xf32> to vector<8x8xf32>
    %33 = arith.subf %20, %32 : vector<8x8xf32>
    %34 = math.exp %33 : vector<8x8xf32>
    %cst_13 = arith.constant dense<0.000000e+00> : vector<8xf32>
    %35 = vector.multi_reduction <add>, %34, %cst_13 [1] : vector<8x8xf32> to vector<8xf32>
    %36 = vector.shape_cast %35 : vector<8xf32> to vector<8x1xf32>
    %37 = math.log %36 : vector<8x1xf32>
    %38 = arith.addf %24, %37 : vector<8x1xf32>
    %39 = vector.broadcast %31 : vector<8x1xi32> to vector<8x8xi32>
    %40 = arith.cmpi eq, %25, %39 : vector<8x8xi32>
    %cst_14 = arith.constant 0.000000e+00 : f32
    %41 = vector.broadcast %cst_14 : f32 to vector<8x8xf32>
    %42 = arith.select %40, %20, %41 : vector<8x8xi1>, vector<8x8xf32>
    %cst_15 = arith.constant dense<0.000000e+00> : vector<8xf32>
    %43 = vector.multi_reduction <add>, %42, %cst_15 [1] : vector<8x8xf32> to vector<8xf32>
    %44 = vector.shape_cast %43 : vector<8xf32> to vector<8x1xf32>
    %45 = arith.subf %44, %38 : vector<8x1xf32>
    %46 = vector.shape_cast %5 : vector<1x1xf32> to vector<1x1xf32>
    %47 = vector.broadcast %46 : vector<1x1xf32> to vector<8x1xf32>
    %cst_16 = arith.constant 0.000000e+00 : f32
    %48 = vector.broadcast %cst_16 : f32 to vector<8x128xf32>
    %c0_17 = arith.constant 0 : index
    %c0_18 = arith.constant 0 : index
    %49 = vector.load %arg6[%c0_17, %c0_18] : memref<8x128xf32, #tpu.memory_space<vmem>>, vector<8x128xf32>
    tpu.vector_store %arg6[%c0_17, %c0_18], %48 {strides = array<i32>} : memref<8x128xf32, #tpu.memory_space<vmem>>, vector<8x128xf32>,
    %c0_19 = arith.constant 0 : index
    %c0_20 = arith.constant 0 : index
    %50 = vector.load %arg6[%c0_19, %c0_20] : memref<8x128xf32, #tpu.memory_space<vmem>>, vector<8x4xf32>
    tpu.vector_store %arg6[%c0_19, %c0_20], %21 {strides = array<i32>} : memref<8x128xf32, #tpu.memory_space<vmem>>, vector<8x4xf32>,
    %c0_21 = arith.constant 0 : index
    %c4 = arith.constant 4 : index
    %51 = vector.load %arg6[%c0_21, %c4] : memref<8x128xf32, #tpu.memory_space<vmem>>, vector<8x1xf32>
    tpu.vector_store %arg6[%c0_21, %c4], %22 {strides = array<i32>} : memref<8x128xf32, #tpu.memory_space<vmem>>, vector<8x1xf32>,
    %c0_22 = arith.constant 0 : index
    %c5 = arith.constant 5 : index
    %52 = vector.load %arg6[%c0_22, %c5] : memref<8x128xf32, #tpu.memory_space<vmem>>, vector<8x1xf32>
    tpu.vector_store %arg6[%c0_22, %c5], %45 {strides = array<i32>} : memref<8x128xf32, #tpu.memory_space<vmem>>, vector<8x1xf32>,
    %c0_23 = arith.constant 0 : index
    %c6 = arith.constant 6 : index
    %53 = vector.load %arg6[%c0_23, %c6] : memref<8x128xf32, #tpu.memory_space<vmem>>, vector<8x1xf32>
    tpu.vector_store %arg6[%c0_23, %c6], %47 {strides = array<i32>} : memref<8x128xf32, #tpu.memory_space<vmem>>, vector<8x1xf32>,
    %54 = arith.sitofp %31 : vector<8x1xi32> to vector<8x1xf32>
    %c0_24 = arith.constant 0 : index
    %c7 = arith.constant 7 : index
    %55 = vector.load %arg6[%c0_24, %c7] : memref<8x128xf32, #tpu.memory_space<vmem>>, vector<8x1xf32>
    tpu.vector_store %arg6[%c0_24, %c7], %54 {strides = array<i32>} : memref<8x128xf32, #tpu.memory_space<vmem>>, vector<8x1xf32>,
    return
  }
  func.func @transform_0(%arg0: i32) -> (i32, i32) {
    %c0_i32 = arith.constant 0 : i32
    %c0_i32_0 = arith.constant 0 : i32
    return %arg0, %c0_i32 : i32, i32
  }
  func.func @transform_1(%arg0: i32) -> (i32, i32) {
    %c0_i32 = arith.constant 0 : i32
    %c0_i32_0 = arith.constant 0 : i32
    %c0_i32_1 = arith.constant 0 : i32
    return %c0_i32, %c0_i32_0 : i32, i32
  }
  func.func @transform_2(%arg0: i32) -> (i32, i32) {
    %c0_i32 = arith.constant 0 : i32
    %c0_i32_0 = arith.constant 0 : i32
    %c0_i32_1 = arith.constant 0 : i32
    return %c0_i32, %c0_i32_0 : i32, i32
  }
  func.func @transform_3(%arg0: i32) -> (i32, i32) {
    %c0_i32 = arith.constant 0 : i32
    %c0_i32_0 = arith.constant 0 : i32
    %c0_i32_1 = arith.constant 0 : i32
    return %c0_i32, %c0_i32_0 : i32, i32
  }
  func.func @transform_4(%arg0: i32) -> (i32, i32) {
    %c0_i32 = arith.constant 0 : i32
    %c0_i32_0 = arith.constant 0 : i32
    %c0_i32_1 = arith.constant 0 : i32
    return %c0_i32, %c0_i32_0 : i32, i32
  }
  func.func @transform_5(%arg0: i32) -> (i32, i32) {
    %c0_i32 = arith.constant 0 : i32
    %c0_i32_0 = arith.constant 0 : i32
    return %arg0, %c0_i32 : i32, i32
  }
}

</mosaic_0001>

<bundles_post_ra>
// kernel: tpu_custom_call.1
= control target key start
LH: loop header
LB: loop body
LE: loop exit
PB: predicated region body
PF: predicated region fallthrough
CT: control target
= control target key end

     0   :  { %10 = vsyncpa [#allocation3], 0  ;;  %s723_s0 = inlined_call_operand.vmem [shape: f32[8,32], index: 0, kind: input, shape index: {}]   ;;  %s724_s1 = inlined_call_operand.vmem [shape: f32[32,192], index: 1, kind: input, shape index: {}]   ;;  %s725_s2 = inlined_call_operand.hbm [shape: f32[192,192], index: 2, kind: input, shape index: {}]   ;;  %s726_s3 = inlined_call_operand.vmem [shape: f32[192,13], index: 3, kind: input, shape index: {}]   ;;  %s727_s4 = inlined_call_operand.vmem [shape: f32[4,192], index: 4, kind: input, shape index: {}]   ;;  %s728_s5 = inlined_call_operand.hbm [shape: f32[8,128], index: 5, kind: output, shape index: {}]  }
   0x1   :  { %11 = vsyncpa [#allocation4], 0  ;;  %s528_s18 = smov [#allocation2]  }
   0x2   :  { %s21_s19 = sshll.u32 %s528_s18, 4  ;;  %s22_s19 = int_to_ptr.vmem [resolvable:$true] %s21_s19 }
   0x3   :  { %s492_s20 = scalar_lea.vmem %s22_s19, 6144  ;;  %p497_p1 = scmp.lt.s32.totalorder %s22_s19, %s22_s19 }
   0x4   :  { %p493_p0 = scmp.ne.s32.totalorder %s22_s19, %s492_s20  ;;  %p498_p2 = scmp.lt.s32.totalorder %s492_s20, %s492_s20 }
   0x6   :  { %p499_p3 = por %p498_p2, %p497_p1 }
   0x8   :  { %p500_p4 = pnand %p499_p3, %p493_p0 }
   0xa   :  { %503 = shalt.err (!%p500_p4)
}
   0xb   :  { %s529_s21 = smov 256   ;;  %s530_s22 = smov 16  }
   0xc   :  { %27 = dma.hbm_to_vmem [thread:$0]  %s725_s2, 6144, %s22_s19, [#allocation3], %s529_s21, %s529_s21, %s530_s22  }
   0xd   :  { %524 = dma.done.wait [#allocation3], 6144  }
   0xe   :  { %525 = vsyncadd [#allocation3], 4294961152  ;;  %v531_v0 = vmov 0.0   ;;  %v44_v1 = vld [vmem:[%s724_s1 + $0x38] sm:$0xff]  ;;  %v43_v2 = vld [vmem:[%s724_s1 + $0x30] sm:$0xff]  ;;  %vm64_vm0 = vcmask 261120  }
   0xf   :  { %132 = vmatprep.mubr.f32.mxu0 %v531_v0  ;;  %427 = vst [vmem:[#allocation5] sm:$0xff] %v531_v0  ;;  %v42_v3 = vld [vmem:[%s724_s1 + $0x28] sm:$0xff]  ;;  %92 = vmatprep.subr.mxu0 %v44_v1  ;;  %v41_v4 = vld [vmem:[%s724_s1 + $0x20] sm:$0xff]  ;;  %v40_v5 = vld [vmem:[%s724_s1 + $0x18] sm:$0xff]  ;;  %vm207_vm1 = vcmask 523264   ;;  %vm385_vm2 = vcmask 64512  }
  0x10   :  { %93 = vmatpush1.msra.mxu0 %v43_v2  ;;  %v39_v6 = vld [vmem:[%s724_s1 + $0x10] sm:$0xff]  ;;  %v172_v7 = vld [vmem:[#allocation2 + $0xf8] sm:$0xff]  ;;  %v170_v9 = vld [vmem:[#allocation2 + $0xe8] sm:$0xff]  ;;  %vm432_vm6 = vcmask 31744   ;;  %vm434_vm7 = vcmask 39968   ;;  %s533_s10 = smov 6  }
  0x11   :  { %94 = vmatprep.subr.mxu0 %v42_v3  ;;  %v171_v8 = vld [vmem:[#allocation2 + $0xf0] sm:$0xff]  ;;  %v38_v10 = vld [vmem:[%s724_s1 + $0x8] sm:$0xff]  ;;  %211 = vmatprep.subr.mxu1 %v172_v7  ;;  %v169_v11 = vld [vmem:[#allocation2 + $0xe0] sm:$0xff]  ;;  %vm436_vm8 = vcmask 48168   ;;  %s534_s11 = smov [#allocation5]   ;;  %vm442_vm9 = vcmask 56368  }
  0x12   :  { %95 = vmatpush1.msra.mxu0 %v41_v4  ;;  %v37_v12 = vld [vmem:[%s724_s1] sm:$0xff]  ;;  %212 = vmatpush1.msra.mxu1 %v171_v8  ;;  %v168_v13 = vld [vmem:[#allocation2 + $0xd8] sm:$0xff]  ;;  %v167_v15 = vld [vmem:[#allocation2 + $0xd0] sm:$0xff]  ;;  %s453_s12 = sshll.u32 %s534_s11, 4  ;;  %vm445_vm10 = vcmask 64568   ;;  %s454_s12 = int_to_ptr.vmem [resolvable:$true] %s453_s12 }
  0x13   :  { %96 = vmatprep.subr.mxu0 %v40_v5  ;;  %v35_v14 = vld [vmem:[%s723_s0] sm:$0xff]  ;;  %213 = vmatprep.subr.mxu1 %v170_v9  ;;  %v166_v16 = vld [vmem:[#allocation2 + $0xc8] sm:$0xff]  ;;  %v164_v18 = vld [vmem:[#allocation2 + $0xb8] sm:$0xff]  ;;  %v46_v9 = vlaneseq  ;;  %s504_s13 = scalar_lea.vmem %s454_s12, 128  ;;  %p509_p6 = scmp.lt.s32.totalorder %s454_s12, %s454_s12 }
  0x14   :  { %97 = vmatpush1.msra.mxu0 %v39_v6  ;;  %214 = vmatpush1.msra.mxu1 %v169_v11  ;;  %v165_v17 = vld [vmem:[#allocation2 + $0xc0] sm:$0xff]  ;;  %v163_v19 = vld [vmem:[#allocation2 + $0xb0] sm:$0xff]  ;;  %v162_v20 = vld [vmem:[#allocation2 + $0xa8] sm:$0xff]  ;;  %p505_p5 = scmp.ne.s32.totalorder %s454_s12, %s504_s13  ;;  %p510_p7 = scmp.lt.s32.totalorder %s504_s13, %s504_s13 }
  0x15   :  { %98 = vmatprep.subr.mxu0 %v38_v10  ;;  %215 = vmatprep.subr.mxu1 %v168_v13  ;;  %v161_v21 = vld [vmem:[#allocation2 + $0xa0] sm:$0xff]  ;;  %v160_v22 = vld [vmem:[#allocation2 + $0x98] sm:$0xff]  ;;  %v159_v23 = vld [vmem:[#allocation2 + $0x90] sm:$0xff]  ;;  %v655_v10 = vshrl.u32 %v46_v9, 7 }
  0x16   :  { %99 = vmatpush1.msra.mxu0 %v37_v12  ;;  %216 = vmatpush1.msra.mxu1 %v167_v15  ;;  %v158_v24 = vld [vmem:[#allocation2 + $0x88] sm:$0xff]  ;;  %v157_v25 = vld [vmem:[#allocation2 + $0x80] sm:$0xff]  ;;  %v156_v26 = vld [vmem:[#allocation2 + $0x78] sm:$0xff]  ;;  %p511_p8 = por %p510_p7, %p509_p6 }
  0x17   :  { %462 = vmatmul.mubr.msk.f32.vlgmr.msra.gmra.mxu0 %vm64_vm0, %v35_v14  ;;  %217 = vmatprep.subr.mxu1 %v166_v16  ;;  %v155_v27 = vld [vmem:[#allocation2 + $0x70] sm:$0xff]  ;;  %v154_v28 = vld [vmem:[#allocation2 + $0x68] sm:$0xff]  ;;  %v153_v29 = vld [vmem:[#allocation2 + $0x60] sm:$0xff]  ;;  %v48_v11 = vsub.s32 0, %v655_v10  ;;  %v52_v13 = vsub.s32 4, %v655_v10 }
  0x18   :  { %315 = vmatprep.subr.mxu0 %v531_v0  ;;  %218 = vmatpush1.msra.mxu1 %v165_v17  ;;  %v152_v30 = vld [vmem:[#allocation2 + $0x58] sm:$0xff]  ;;  %v151_v31 = vld [vmem:[#allocation2 + $0x50] sm:$0xff]  ;;  %v150_v32 = vld [vmem:[#allocation2 + $0x48] sm:$0xff]  ;;  %p512_p9 = pnand %p511_p8, %p505_p5 }
  0x19   :  { %219 = vmatprep.subr.mxu1 %v164_v18  ;;  %v149_v33 = vld [vmem:[#allocation2 + $0x40] sm:$0xff]  ;;  %v148_v34 = vld [vmem:[#allocation2 + $0x38] sm:$0xff]  ;;  %v147_v35 = vld [vmem:[#allocation2 + $0x30] sm:$0xff] }
  0x1a   :  { %220 = vmatpush1.msra.mxu1 %v163_v19  ;;  %v146_v36 = vld [vmem:[#allocation2 + $0x28] sm:$0xff]  ;;  %v145_v37 = vld [vmem:[#allocation2 + $0x20] sm:$0xff]  ;;  %v144_v38 = vld [vmem:[#allocation2 + $0x18] sm:$0xff] }
  0x1b   :  { %221 = vmatprep.subr.mxu1 %v162_v20  ;;  %v143_v39 = vld [vmem:[#allocation2 + $0x10] sm:$0xff]  ;;  %v142_v40 = vld [vmem:[#allocation2 + $0x8] sm:$0xff]  ;;  %v141_v41 = vld [vmem:[#allocation2] sm:$0xff] }
  0x1c   :  { %222 = vmatpush1.msra.mxu1 %v161_v21  ;;  %v188_v42 = vld [vmem:[#allocation2 + $0x178] sm:$0xff]  ;;  %v187_v43 = vld [vmem:[#allocation2 + $0x170] sm:$0xff]  ;;  %v186_v44 = vld [vmem:[#allocation2 + $0x168] sm:$0xff] }
  0x1d   :  { %223 = vmatprep.subr.mxu1 %v160_v22  ;;  %v185_v45 = vld [vmem:[#allocation2 + $0x160] sm:$0xff]  ;;  %v184_v46 = vld [vmem:[#allocation2 + $0x158] sm:$0xff]  ;;  %v183_v47 = vld [vmem:[#allocation2 + $0x150] sm:$0xff] }
  0x1e   :  { %224 = vmatpush1.msra.mxu1 %v159_v23  ;;  %v182_v48 = vld [vmem:[#allocation2 + $0x148] sm:$0xff]  ;;  %v181_v49 = vld [vmem:[#allocation2 + $0x140] sm:$0xff]  ;;  %v180_v50 = vld [vmem:[#allocation2 + $0x138] sm:$0xff] }
  0x1f   :  { %225 = vmatprep.subr.mxu1 %v158_v24  ;;  %v179_v51 = vld [vmem:[#allocation2 + $0x130] sm:$0xff]  ;;  %v178_v52 = vld [vmem:[#allocation2 + $0x128] sm:$0xff]  ;;  %v177_v53 = vld [vmem:[#allocation2 + $0x120] sm:$0xff] }
  0x20   :  { %226 = vmatpush1.msra.mxu1 %v157_v25  ;;  %v176_v54 = vld [vmem:[#allocation2 + $0x118] sm:$0xff]  ;;  %v175_v55 = vld [vmem:[#allocation2 + $0x110] sm:$0xff]  ;;  %v174_v56 = vld [vmem:[#allocation2 + $0x108] sm:$0xff] }
  0x21   :  { %227 = vmatprep.subr.mxu1 %v156_v26  ;;  %v173_v57 = vld [vmem:[#allocation2 + $0x100] sm:$0xff]  ;;  %v299_v58 = vld [vmem:[%s726_s3 + $0x78] sm:$0xff]  ;;  %v298_v59 = vld [vmem:[%s726_s3 + $0x70] sm:$0xff] }
  0x22   :  { %228 = vmatpush1.msra.mxu1 %v155_v27  ;;  %316 = vmatpush1.msra.mxu0 %v299_v58  ;;  %v297_v60 = vld [vmem:[%s726_s3 + $0x68] sm:$0xff]  ;;  %v296_v61 = vld [vmem:[%s726_s3 + $0x60] sm:$0xff]  ;;  %v295_v62 = vld [vmem:[%s726_s3 + $0x58] sm:$0xff] }
  0x23   :  { %229 = vmatprep.subr.mxu1 %v154_v28  ;;  %317 = vmatprep.subr.mxu0 %v531_v0  ;;  %v294_v63 = vld [vmem:[%s726_s3 + $0x50] sm:$0xff]  ;;  %v293_v1 = vld [vmem:[%s726_s3 + $0x48] sm:$0xff]  ;;  %v292_v2 = vld [vmem:[%s726_s3 + $0x40] sm:$0xff] }
  0x24   :  { %230 = vmatpush1.msra.mxu1 %v153_v29  ;;  %318 = vmatpush1.msra.mxu0 %v298_v59  ;;  %v291_v3 = vld [vmem:[%s726_s3 + $0x38] sm:$0xff]  ;;  %v290_v4 = vld [vmem:[%s726_s3 + $0x30] sm:$0xff]  ;;  %v289_v5 = vld [vmem:[%s726_s3 + $0x28] sm:$0xff] }
  0x25   :  { %231 = vmatprep.subr.mxu1 %v152_v30  ;;  %319 = vmatprep.subr.mxu0 %v531_v0  ;;  %v288_v6 = vld [vmem:[%s726_s3 + $0x20] sm:$0xff]  ;;  %v287_v7 = vld [vmem:[%s726_s3 + $0x18] sm:$0xff]  ;;  %v286_v8 = vld [vmem:[%s726_s3 + $0x10] sm:$0xff] }
  0x26   :  { %232 = vmatpush1.msra.mxu1 %v151_v31  ;;  %320 = vmatpush1.msra.mxu0 %v297_v60  ;;  %v661_v12 = vld [vmem:[%s727_s4] sm:$0xff]  ;;  %v285_v24 = vld [vmem:[%s726_s3 + $0x8] sm:$0xff]  ;;  %v307_v26 = vld [vmem:[%s726_s3 + $0xb8] sm:$0xff] }
  0x27   :  { %233 = vmatprep.subr.mxu1 %v150_v32  ;;  %321 = vmatprep.subr.mxu0 %v531_v0  ;;  %v49_v14 = vrot.slane %v661_v12, %v48_v11  ;;  %v53_v15 = vrot.slane %v661_v12, %v52_v13  ;;  %v284_v25 = vld [vmem:[%s726_s3] sm:$0xff]  ;;  %v306_v27 = vld [vmem:[%s726_s3 + $0xb0] sm:$0xff]  ;;  %v305_v28 = vld [vmem:[%s726_s3 + $0xa8] sm:$0xff]  ;;  %v425_v13 = vsub.s32 3, %v655_v10 }
  0x28   :  { %234 = vmatpush1.msra.mxu1 %v149_v33  ;;  %322 = vmatpush1.msra.mxu0 %v296_v61  ;;  %v304_v29 = vld [vmem:[%s726_s3 + $0xa0] sm:$0xff]  ;;  %v303_v30 = vld [vmem:[%s726_s3 + $0x98] sm:$0xff]  ;;  %v302_v31 = vld [vmem:[%s726_s3 + $0x90] sm:$0xff] }
  0x29   :  { %235 = vmatprep.subr.mxu1 %v148_v34  ;;  %323 = vmatprep.subr.mxu0 %v531_v0  ;;  %v59_v16 = vrot.slane %v49_v14, %v48_v11  ;;  %v63_v17 = vrot.slane %v53_v15, %v48_v11  ;;  %v301_v32 = vld [vmem:[%s726_s3 + $0x88] sm:$0xff]  ;;  %v300_v33 = vld [vmem:[%s726_s3 + $0x80] sm:$0xff]  ;;  %v191_v34 = vsub.s32 1, %v655_v10  ;;  %s532_s3 = smov 120   ;;  %v426_v14 = vrot.slane %v661_v12, %v425_v13 }
  0x2a   :  { %236 = vmatpush1.msra.mxu1 %v147_v35  ;;  %324 = vmatpush1.msra.mxu0 %v295_v62  ;;  %v195_v35 = vsub.s32 5, %v655_v10 }
  0x2b   :  { %237 = vmatprep.subr.mxu1 %v146_v36  ;;  %325 = vmatprep.subr.mxu0 %v531_v0  ;;  %v192_v36 = vrot.slane %v661_v12, %v191_v34 }
  0x2c   :  { %238 = vmatpush1.msra.mxu1 %v145_v37  ;;  %326 = vmatpush1.msra.mxu0 %v294_v63  ;;  %v196_v37 = vrot.slane %v661_v12, %v195_v35 }
  0x2d   :  { %239 = vmatprep.subr.mxu1 %v144_v38  ;;  %327 = vmatprep.subr.mxu0 %v531_v0  ;;  %v202_v38 = vrot.slane %v192_v36, %v191_v34 }
  0x2e   :  { %240 = vmatpush1.msra.mxu1 %v143_v39  ;;  %328 = vmatpush1.msra.mxu0 %v293_v1  ;;  %v206_v39 = vrot.slane %v196_v37, %v191_v34 }
  0x2f   :  { %241 = vmatprep.subr.mxu1 %v142_v40  ;;  %329 = vmatprep.subr.mxu0 %v531_v0 }
  0x30   :  { %242 = vmatpush1.msra.mxu1 %v141_v41  ;;  %330 = vmatpush1.msra.mxu0 %v292_v2 }
  0x31   :  { %259 = vmatprep.subr.mxu1 %v188_v42  ;;  %331 = vmatprep.subr.mxu0 %v531_v0 }
  0x32   :  { %260 = vmatpush2.msra.mxu1 %v187_v43  ;;  %332 = vmatpush1.msra.mxu0 %v291_v3 }
  0x33   :  { %261 = vmatprep.subr.mxu1 %v186_v44  ;;  %333 = vmatprep.subr.mxu0 %v531_v0 }
  0x34   :  { %262 = vmatpush2.msra.mxu1 %v185_v45  ;;  %334 = vmatpush1.msra.mxu0 %v290_v4 }
  0x35   :  { %263 = vmatprep.subr.mxu1 %v184_v46  ;;  %335 = vmatprep.subr.mxu0 %v531_v0 }
  0x36   :  { %264 = vmatpush2.msra.mxu1 %v183_v47  ;;  %336 = vmatpush1.msra.mxu0 %v289_v5 }
  0x37   :  { %265 = vmatprep.subr.mxu1 %v182_v48  ;;  %337 = vmatprep.subr.mxu0 %v531_v0 }
  0x38   :  { %266 = vmatpush2.msra.mxu1 %v181_v49  ;;  %338 = vmatpush1.msra.mxu0 %v288_v6 }
  0x39   :  { %267 = vmatprep.subr.mxu1 %v180_v50  ;;  %339 = vmatprep.subr.mxu0 %v531_v0 }
  0x3a   :  { %268 = vmatpush2.msra.mxu1 %v179_v51  ;;  %340 = vmatpush1.msra.mxu0 %v287_v7  ;;  %v390_v51 = vand.u32 127, %v46_v9 }
  0x3b   :  { %269 = vmatprep.subr.mxu1 %v178_v52  ;;  %341 = vmatprep.subr.mxu0 %v531_v0 }
  0x3c   :  { %270 = vmatpush2.msra.mxu1 %v177_v53  ;;  %342 = vmatpush1.msra.mxu0 %v286_v8 }
  0x3d   :  { %271 = vmatprep.subr.mxu1 %v176_v54  ;;  %343 = vmatprep.subr.mxu0 %v531_v0 }
  0x3e   :  { %272 = vmatpush2.msra.mxu1 %v175_v55  ;;  %344 = vmatpush1.msra.mxu0 %v285_v24 }
  0x3f   :  { %273 = vmatprep.subr.mxu1 %v174_v56  ;;  %345 = vmatprep.subr.mxu0 %v531_v0 }
  0x40   :  { %274 = vmatpush2.msra.mxu1 %v173_v57  ;;  %346 = vmatpush1.msra.mxu0 %v284_v25 }
  0x41   :  { %363 = vmatprep.subr.mxu0 %v531_v0 }
  0x42   :  { %364 = vmatpush2.msra.mxu0 %v307_v26 }
  0x43   :  { %365 = vmatprep.subr.mxu0 %v531_v0 }
  0x44   :  { %366 = vmatpush2.msra.mxu0 %v306_v27 }
  0x45   :  { %367 = vmatprep.subr.mxu0 %v531_v0 }
  0x46   :  { %368 = vmatpush2.msra.mxu0 %v305_v28 }
  0x47   :  { %369 = vmatprep.subr.mxu0 %v531_v0 }
  0x48   :  { %370 = vmatpush2.msra.mxu0 %v304_v29 }
  0x49   :  { %371 = vmatprep.subr.mxu0 %v531_v0 }
  0x4a   :  { %372 = vmatpush2.msra.mxu0 %v303_v30 }
  0x4b   :  { %373 = vmatprep.subr.mxu0 %v531_v0 }
  0x4c   :  { %374 = vmatpush2.msra.mxu0 %v302_v31 }
  0x4d   :  { %375 = vmatprep.subr.mxu0 %v531_v0 }
  0x4e   :  { %376 = vmatpush2.msra.mxu0 %v301_v32 }
  0x4f   :  { %377 = vmatprep.subr.mxu0 %v531_v0  ;;  %v310_v0 = vsub.s32 2, %v655_v10 }
  0x50   :  { %378 = vmatpush2.msra.mxu0 %v300_v33 }
  0x51   :  { %v311_v46 = vrot.slane %v661_v12, %v310_v0 }
  0xd7   :  { %v134_v18 = vpop.f32.mrf.mxu0 }
  0xd8   :  { %v135_v19 = vadd.f32 %v134_v18, %v59_v16 }
  0xd9   :  { %v136_v20 = vpop.f32.mrf.mxu0 }
  0xda   :  { %v137_v21 = vadd.f32 %v136_v20, %v63_v17 }
  0xdc   :  { %472 = vtanh.f32 %v137_v21 }
  0xdd   :  { %474 = vtanh.f32 %v135_v19 }
  0xe9   :  { %v473_v22 = vpop.eup %472 }
  0xea   :  { %v475_v23 = vpop.eup %474  ;;  %463 = vmatprep.mubr.msk.f32.mxu1 %vm207_vm1, %v473_v22 }
  0xeb   :  { %276 = vmatmul.mubr.f32.vlgmr.msra.gmra.mxu1 %v475_v23 }
 0x1ab   :  { %v277_v40 = vpop.f32.mrf.mxu1 }
 0x1ac   :  { %v278_v41 = vadd.f32 %v277_v40, %v202_v38 }
 0x1ad   :  { %v279_v42 = vpop.f32.mrf.mxu1 }
 0x1ae   :  { %v280_v43 = vadd.f32 %v279_v42, %v206_v39 }
 0x1b0   :  { %476 = vtanh.f32 %v280_v43 }
 0x1b1   :  { %478 = vtanh.f32 %v278_v41 }
 0x1bd   :  { %v477_v44 = vpop.eup %476 }
 0x1be   :  { %v479_v45 = vpop.eup %478  ;;  %464 = vmatprep.mubr.msk.f32.mxu0 %vm207_vm1, %v477_v44 }
 0x1bf   :  { %380 = vmatmul.mubr.f32.vlgmr.msra.gmra.mxu0 %v479_v45 }
 0x27f   :  { %v381_v47 = vpop.f32.mrf.mxu0 }
 0x280   :  { %v382_v48 = vadd.f32 %v381_v47, %v311_v46 }
 0x281   :  { %v383_v49 = vpop.f32.mrf.mxu0 }
 0x282   :  { %v386_v50 = vsel %vm385_vm2, %v382_v48, -inf }
 0x283   :  { %387 = vmax.xlane.f32.xlu0 %v386_v50 }
 0x30c   :  { %v388_v52 = vpop.xlane.xlu0 %387 }
 0x30d   :  { %vm391_vm3 = vcmp.eq.f32.partialorder %v382_v48, %v388_v52  ;;  %v408_v57 = vsub.f32 %v382_v48, %v388_v52 }
 0x30e   :  { %v392_v53 = vsel %vm391_vm3, %v390_v51, 8 }
 0x30f   :  { %v393_v54 = vsel %vm385_vm2, %v392_v53, 2147483647  ;;  %v409_v58 = vmul.f32 1.442695, %v408_v57 }
 0x310   :  { %v395_v55 = vshra.s32 %v393_v54, 16  ;;  %v394_v59 = vand.u32 65535, %v393_v54 }
 0x311   :  { %480 = vpow2.f32 %v409_v58 }
 0x312   :  { %v397_v56 = vcvt.s32.f32 %v395_v55  ;;  %v396_v61 = vcvt.s32.f32 %v394_v59 }
 0x314   :  { %398 = vmin.xlane.f32.xlu0 %v397_v56 }
 0x31e   :  { %v481_v63 = vpop.eup %480 }
 0x31f   :  { %v411_v1 = vsel %vm385_vm2, %v481_v63, 0.0 }
 0x39d   :  { %v399_v60 = vpop.xlane.xlu0 %398 }
 0x39e   :  { %vm400_vm4 = vcmp.eq.f32.partialorder %v397_v56, %v399_v60  ;;  %v405_v2 = vcvt.f32.s32 %v399_v60 }
 0x39f   :  { %v401_v62 = vsel %vm400_vm4, %v396_v61, inf }
 0x3a0   :  { %402 = vmin.xlane.f32.xlu1 %v401_v62  ;;  %v406_v4 = vshll.u32 %v405_v2, 16 }
 0x3a4   :  { %412 = vadd.xlane.f32.xlu1 %v411_v1 }
 0x3b5   :  { %429 = vrot.lane.b32.xlu1 %v382_v48, %s532_s3 }
 0x429   :  { %v403_v3 = vpop.xlane.xlu1 %402 }
 0x42a   :  { %v404_v5 = vcvt.f32.s32 %v403_v3 }
 0x42c   :  { %v407_v6 = vadd.s32 %v406_v4, %v404_v5 }
 0x42d   :  { %v413_v7 = vpop.xlane.xlu1 %412 }
 0x42e   :  { %vm417_vm5 = vcmp.eq.s32.totalorder %v390_v51, %v407_v6  ;;  %482 = vlog2.f32 %v413_v7  ;;  %v444_v20 = vcvt.s32.f32 %v407_v6 }
 0x42f   :  { %v418_v8 = vsel %vm417_vm5, %v382_v48, 0.0 }
 0x430   :  { %v419_v9 = vsel %vm385_vm2, %v418_v8, 0.0 }
 0x431   :  { %420 = vadd.xlane.f32.xlu0 %v419_v9  ;;  %v430_v11 = vpop.permute.xlu1 %429 }
 0x432   :  { %433 = vst.msk [vmem:[#allocation5] sm:$0xff] %vm432_vm6, %v430_v11 }
 0x433   :  { %435 = vst.msk [vmem:[#allocation5] sm:$0xff] %vm434_vm7, %v430_v11 }
 0x43b   :  { %v483_v15 = vpop.eup %482 }
 0x43c   :  { %v415_v16 = vmul.f32 0.6931472, %v483_v15 }
 0x43e   :  { %v416_v17 = vadd.f32 %v415_v16, %v388_v52 }
 0x447   :  { %439 = vrot.lane.b32.xlu0 %v426_v14, %s533_s10 }
 0x4ba   :  { %v421_v18 = vpop.xlane.xlu0 %420 }
 0x4bb   :  { %v422_v19 = vsub.f32 %v421_v18, %v416_v17 }
 0x4bd   :  { %437 = vst.msk [vmem:[#allocation5] sm:$0xff] %vm436_vm8, %v422_v19 }
 0x4be   :  { %v440_v21 = vpop.permute.xlu0 %439 }
 0x4bf   :  { %443 = vst.msk [vmem:[#allocation5] sm:$0xff] %vm442_vm9, %v440_v21 }
 0x4c0   :  { %446 = vst.msk [vmem:[#allocation5] sm:$0xff] %vm445_vm10, %v444_v20 }
 0x4c1   :  { %515 = shalt.err (!%p512_p9)
}
 0x4c2   :  { %456 = dma.vmem_to_hbm [thread:$0]  %s454_s12, 128, %s728_s5, [#allocation4]  }
 0x4c3   :  { %526 = dma.done.wait [#allocation4], 128  }
 0x4c4   :  { %527 = vsyncadd [#allocation4], 4294967168 }
 0x4c5   :  { %460 = vsyncpa [#allocation3], 1 }
 0x4c6   :  { %461 = vsyncpa [#allocation4], 1 }

</bundles_post_ra>
